<compile_context>
chip_gen: v5e
topology: v5e:2x2
jax: 0.10.0
libtpu: 0.0.40
codegen_flags: <defaults>
</compile_context>

<pallas_src>
import math

import jax
import jax.numpy as jnp
from jax.experimental import pallas as pl
from jax.experimental.pallas import tpu as pltpu

BN_EPS = 1e-5
LRELU_SLOPE = 0.1


# ----------------------------------------------------------------------------
# Tile selection (128-lane aligned, exact divisors so contraction tiles never
# read padded garbage into the accumulator).
# ----------------------------------------------------------------------------
def _pick_tile(dim, cap):
    """Largest 128-aligned tile <= cap that exactly divides dim, else the full dim."""
    if dim <= cap:
        return dim
    t = (cap // 128) * 128
    while t >= 128:
        if dim % t == 0:
            return t
        t -= 128
    return dim


# ----------------------------------------------------------------------------
# Shared in-kernel epilogue: training-mode BatchNorm (batch stats over all rows,
# per channel on the lane axis) + LeakyReLU(0.1). rsqrt lands on the EUP slot.
# ----------------------------------------------------------------------------
def _bn_lrelu(y, gamma, beta):
    inv_cnt = 1.0 / y.shape[0]                                   # static Python float
    mean = jnp.sum(y, axis=0, keepdims=True) * inv_cnt
    diff = y - mean
    var = jnp.sum(diff * diff, axis=0, keepdims=True) * inv_cnt  # biased variance (torch train BN)
    scale = gamma * jax.lax.rsqrt(var + BN_EPS)
    shift = beta - mean * scale
    z = y * scale + shift
    return jnp.maximum(z, LRELU_SLOPE * z)                       # LeakyReLU(0.1)


# ----------------------------------------------------------------------------
# Pallas kernels
# ----------------------------------------------------------------------------
def _conv_bn_lrelu_single_kernel(p_ref, w_ref, bc_ref, g_ref, be_ref, o_ref):
    """Single-contraction-tile fast path: grid = (co_tiles,). No scratch / pl.when gating.

    p_ref:  [M, K]      im2col patches (M = N*H*W rows, full -- BN stats need all rows)
    w_ref:  [K, TCo]    im2col weight tile
    bc/g/be:[1, TCo]    conv bias, BN gamma, BN beta
    o_ref:  [M, TCo]
    """
    y = jnp.dot(p_ref[...], w_ref[...], preferred_element_type=jnp.float32) + bc_ref[...]
    o_ref[...] = _bn_lrelu(y, g_ref[...], be_ref[...]).astype(o_ref.dtype)


def _conv_bn_lrelu_acc_kernel(p_ref, w_ref, bc_ref, g_ref, be_ref, o_ref, acc_ref):
    """Multi-k-tile path: grid = (co_tiles [parallel], k_tiles [arbitrary]), fp32 accumulator."""
    k = pl.program_id(1)

    @pl.when(k == 0)
    def _():
        acc_ref[...] = jnp.zeros_like(acc_ref)

    acc_ref[...] += jnp.dot(p_ref[...], w_ref[...], preferred_element_type=jnp.float32)

    @pl.when(k == pl.num_programs(1) - 1)
    def _():
        y = acc_ref[...] + bc_ref[...]
        o_ref[...] = _bn_lrelu(y, g_ref[...], be_ref[...]).astype(o_ref.dtype)


def _linear_single_kernel(x_ref, w_ref, b_ref, o_ref):
    """Single-contraction-tile Linear: grid = (out_tiles,)."""
    o_ref[...] = (jnp.dot(x_ref[...], w_ref[...], preferred_element_type=jnp.float32)
                  + b_ref[...]).astype(o_ref.dtype)


def _linear_acc_kernel(x_ref, w_ref, b_ref, o_ref, acc_ref):
    """Tiled Linear: grid = (out_tiles [parallel], k_tiles [arbitrary]), fp32 accumulator."""
    k = pl.program_id(1)

    @pl.when(k == 0)
    def _():
        acc_ref[...] = jnp.zeros_like(acc_ref)

    acc_ref[...] += jnp.dot(x_ref[...], w_ref[...], preferred_element_type=jnp.float32)

    @pl.when(k == pl.num_programs(1) - 1)
    def _():
        o_ref[...] = (acc_ref[...] + b_ref[...]).astype(o_ref.dtype)


# ----------------------------------------------------------------------------
# pallas_call wrappers
# ----------------------------------------------------------------------------
def fused_conv_bn_lrelu(patches, w_im2col, bc, gamma, beta, *, k_cap=512, co_cap=256):
    """patches: [M, 9*Ci]; w_im2col: [9*Ci, Co]; bc/gamma/beta: [1, Co] -> [M, Co]."""
    m, kk = patches.shape
    co = w_im2col.shape[1]
    tk = _pick_tile(kk, k_cap)     # contraction tile (exact divisor -> no padded accumulation)
    tco = _pick_tile(co, co_cap)   # output-channel tile (lane-dense when Co >= 128)
    k_tiles = kk // tk

    if k_tiles == 1:
        # Fast path: whole contraction in one MXU pass; no accumulator scratch roundtrip.
        return pl.pallas_call(
            _conv_bn_lrelu_single_kernel,
            out_shape=jax.ShapeDtypeStruct((m, co), patches.dtype),
            grid=(co // tco,),
            in_specs=[
                pl.BlockSpec((m, kk), lambda j: (0, 0)),
                pl.BlockSpec((kk, tco), lambda j: (0, j)),
                pl.BlockSpec((1, tco), lambda j: (0, j)),
                pl.BlockSpec((1, tco), lambda j: (0, j)),
                pl.BlockSpec((1, tco), lambda j: (0, j)),
            ],
            out_specs=pl.BlockSpec((m, tco), lambda j: (0, j)),
            compiler_params=pltpu.CompilerParams(dimension_semantics=("parallel",)),
        )(patches, w_im2col, bc, gamma, beta)

    return pl.pallas_call(
        _conv_bn_lrelu_acc_kernel,
        out_shape=jax.ShapeDtypeStruct((m, co), patches.dtype),
        grid=(co // tco, k_tiles),
        in_specs=[
            pl.BlockSpec((m, tk), lambda j, k: (0, k)),
            pl.BlockSpec((tk, tco), lambda j, k: (k, j)),
            pl.BlockSpec((1, tco), lambda j, k: (0, j)),
            pl.BlockSpec((1, tco), lambda j, k: (0, j)),
            pl.BlockSpec((1, tco), lambda j, k: (0, j)),
        ],
        out_specs=pl.BlockSpec((m, tco), lambda j, k: (0, j)),
        scratch_shapes=[pltpu.VMEM((m, tco), jnp.float32)],
        compiler_params=pltpu.CompilerParams(
            dimension_semantics=("parallel", "arbitrary")),
    )(patches, w_im2col, bc, gamma, beta)


def tiled_linear(x2d, w, b, *, k_cap=512, n_cap=256):
    """x2d: [N, K]; w: [K, O] (pre-transposed/folded at init); b: [1, O] -> [N, O]."""
    n, kk = x2d.shape
    o = w.shape[1]
    tk = _pick_tile(kk, k_cap)
    to = _pick_tile(o, n_cap)
    k_tiles = kk // tk

    if k_tiles == 1:
        return pl.pallas_call(
            _linear_single_kernel,
            out_shape=jax.ShapeDtypeStruct((n, o), x2d.dtype),
            grid=(o // to,),
            in_specs=[
                pl.BlockSpec((n, kk), lambda j: (0, 0)),
                pl.BlockSpec((kk, to), lambda j: (0, j)),
                pl.BlockSpec((1, to), lambda j: (0, j)),
            ],
            out_specs=pl.BlockSpec((n, to), lambda j: (0, j)),
            compiler_params=pltpu.CompilerParams(dimension_semantics=("parallel",)),
        )(x2d, w, b)

    return pl.pallas_call(
        _linear_acc_kernel,
        out_shape=jax.ShapeDtypeStruct((n, o), x2d.dtype),
        grid=(o // to, k_tiles),
        in_specs=[
            pl.BlockSpec((n, tk), lambda j, k: (0, k)),
            pl.BlockSpec((tk, to), lambda j, k: (k, j)),
            pl.BlockSpec((1, to), lambda j, k: (0, j)),
        ],
        out_specs=pl.BlockSpec((n, to), lambda j, k: (0, j)),
        scratch_shapes=[pltpu.VMEM((n, to), jnp.float32)],
        compiler_params=pltpu.CompilerParams(
            dimension_semantics=("parallel", "arbitrary")),
    )(x2d, w, b)


def _im2col_3x3(x_nhwc):
    """3x3/s1/p1 window gather (wrapper-side layout plumbing). -> [N*H*W, 9*C]."""
    n, h, w, c = x_nhwc.shape
    xp = jnp.pad(x_nhwc, ((0, 0), (1, 1), (1, 1), (0, 0)))
    cols = [xp[:, dy:dy + h, dx:dx + w, :] for dy in range(3) for dx in range(3)]
    return jnp.concatenate(cols, axis=-1).reshape(n * h * w, 9 * c)


# ----------------------------------------------------------------------------
# Module-level wrapper mirroring Student4FactorTransfer
# ----------------------------------------------------------------------------
class Student4FactorTransfer:
    def __init__(self, key, num_input_channels, num_output_channels,
                 student_in_channels, student_hw, num_classes):
        ci, co = num_input_channels, num_output_channels
        k_l1, k_l2, k_l3, k_sw, k_sb = jax.random.split(key, 5)

        # Translator4FactorTransfer channel plan: (ci->ci), (ci->co), (co->co)
        plan = [(ci, ci, k_l1), (ci, co, k_l2), (co, co, k_l3)]
        self.translator_layers = []     # pre-transformed params used by the kernels
        self.raw_conv_params = []       # original OIHW params, kept only for the JAX reference
        for c_in, c_out, kl in plan:
            kw, kb = jax.random.split(kl, 2)
            lim = 1.0 / math.sqrt(c_in * 9)
            w_oihw = jax.random.uniform(kw, (c_out, c_in, 3, 3), jnp.float32, -lim, lim)
            b = jax.random.uniform(kb, (c_out,), jnp.float32, -lim, lim)
            gamma = jnp.ones((c_out,), jnp.float32)
            beta = jnp.zeros((c_out,), jnp.float32)
            # One-time transform (no per-call transposes): OIHW -> im2col [9*Cin, Cout],
            # row index = (kh*3+kw)*Cin + cin  (matches _im2col_3x3 column order).
            w_im2col = jnp.transpose(w_oihw, (2, 3, 1, 0)).reshape(9 * c_in, c_out)
            self.translator_layers.append(
                (w_im2col, b.reshape(1, c_out), gamma.reshape(1, c_out), beta.reshape(1, c_out)))
            self.raw_conv_params.append((w_oihw, b, gamma, beta))

        # TODO(synk): the real student_model is an arbitrary user network; deterministic synthetic
        # stand-in = global average pool + linear classifier, with the GAP folded into the weight.
        slim = 1.0 / math.sqrt(student_in_channels)
        self.st_w = jax.random.uniform(k_sw, (num_classes, student_in_channels),
                                       jnp.float32, -slim, slim)     # PyTorch Linear layout [K, C]
        self.st_b = jax.random.uniform(k_sb, (num_classes,), jnp.float32, -slim, slim)
        # Folded pooled weight: [C*HW, K], row c*HW + s -> st_w[:, c] / HW  (one MXU matmul,
        # 128+ wide contraction instead of a separate pooling pass).
        self.st_wp = jnp.repeat(self.st_w.T, student_hw, axis=0) / float(student_hw)
        self.st_b2 = self.st_b.reshape(1, -1)

    def forward(self, x_nchw):
        # forward(*args) = self.student_model(*args)
        n = x_nchw.shape[0]
        x2 = x_nchw.reshape(n, -1)                 # lane-dense [N, C*H*W]; GAP folded into st_wp
        return tiled_linear(x2, self.st_wp, self.st_b2)

    def secondary_forward(self, feat_nchw):
        # self.translator(io_dict[self.input_module_path]['output'])
        # (original returns None; we return the translator output for verification)
        x = jnp.transpose(feat_nchw, (0, 2, 3, 1))  # NCHW -> NHWC once (channels on the lane axis)
        for (w_im2col, bc, gamma, beta) in self.translator_layers:
            n, h, w, _ = x.shape
            patches = _im2col_3x3(x)                                        # [N*H*W, 9*Cin]
            y = fused_conv_bn_lrelu(patches, w_im2col, bc, gamma, beta)     # [N*H*W, Cout]
            x = y.reshape(n, h, w, -1)
        return jnp.transpose(x, (0, 3, 1, 2))       # back to PyTorch NCHW layout


# ----------------------------------------------------------------------------
# Pure-JAX references for verification
# ----------------------------------------------------------------------------
def _ref_conv_bn_lrelu(x_nchw, w_oihw, b, gamma, beta):
    y = jax.lax.conv_general_dilated(x_nchw, w_oihw, (1, 1), ((1, 1), (1, 1)),
                                     dimension_numbers=('NCHW', 'OIHW', 'NCHW'))
    y = y + b.reshape(1, -1, 1, 1)
    mean = y.mean(axis=(0, 2, 3), keepdims=True)
    var = ((y - mean) ** 2).mean(axis=(0, 2, 3), keepdims=True)
    y = gamma.reshape(1, -1, 1, 1) * (y - mean) / jnp.sqrt(var + BN_EPS) + beta.reshape(1, -1, 1, 1)
    return jnp.where(y >= 0, y, LRELU_SLOPE * y)


def _ref_student(x_nchw, w, b):
    pooled = x_nchw.reshape(x_nchw.shape[0], x_nchw.shape[1], -1).mean(-1)
    return pooled @ w.T + b


if __name__ == "__main__":
    key = jax.random.PRNGKey(0)
    k_x, k_f, k_p = jax.random.split(key, 3)

    # Small shapes consistent with the module: student input and hooked feature map are NCHW.
    N, C, H, W = 2, 4, 16, 16
    CO = 2              # translator num_output_channels (paraphrased factor channels)
    NUM_CLASSES = 16

    x = jax.random.normal(k_x, (N, C, H, W), jnp.float32)     # student input
    feat = jax.random.normal(k_f, (N, C, H, W), jnp.float32)  # io_dict[input_module_path]['output']

    model = Student4FactorTransfer(k_p, num_input_channels=C, num_output_channels=CO,
                                   student_in_channels=C, student_hw=H * W,
                                   num_classes=NUM_CLASSES)

    logits = jax.block_until_ready(model.forward(x))
    factor = jax.block_until_ready(model.secondary_forward(feat))

    # Verify against pure-JAX references
    ref_logits = _ref_student(x, model.st_w, model.st_b)
    ref_factor = feat
    for (w_oihw, b, gamma, beta) in model.raw_conv_params:
        ref_factor = _ref_conv_bn_lrelu(ref_factor, w_oihw, b, gamma, beta)

    assert logits.shape == (N, NUM_CLASSES)
    assert factor.shape == (N, CO, H, W)
    assert jnp.allclose(logits, ref_logits, atol=1e-4, rtol=1e-4)
    assert jnp.allclose(factor, ref_factor, atol=2e-4, rtol=2e-4)

    print("KERNEL_OK")
</pallas_src>

<mosaic_0001>
module attributes {stable_mosaic.version = 11 : i64} {
  func.func @_linear_acc_kernel(%arg0: i32, %arg1: i32, %arg2: memref<2x512xf32, #tpu.memory_space<vmem>>, %arg3: memref<512x16xf32, #tpu.memory_space<vmem>>, %arg4: memref<1x16xf32, #tpu.memory_space<vmem>>, %arg5: memref<2x16xf32, #tpu.memory_space<vmem>>, %arg6: memref<2x16xf32, #tpu.memory_space<vmem>>) attributes {dimension_semantics = [#tpu.dimension_semantics<parallel>, #tpu.dimension_semantics<arbitrary>], iteration_bounds = array<i64: 1, 2>, scalar_prefetch = 0 : i64, scratch_operands = 1 : i64, tpu.core_type = #tpu.core_type<tc>, window_params = [{transform_indices = @transform_0, window_bounds = array<i64: 2, 512>}, {transform_indices = @transform_1, window_bounds = array<i64: 512, 16>}, {transform_indices = @transform_2, window_bounds = array<i64: 1, 16>}, {transform_indices = @transform_3, window_bounds = array<i64: 2, 16>}]} {
    %c0_i32 = arith.constant 0 : i32
    %0 = arith.cmpi eq, %arg1, %c0_i32 : i32
    %1 = arith.extui %0 : i1 to i32
    %c0_i32_0 = arith.constant 0 : i32
    %2 = arith.cmpi ne, %1, %c0_i32_0 : i32
    scf.if %2 {
      %cst_9 = arith.constant 0.000000e+00 : f32
      %12 = vector.broadcast %cst_9 : f32 to vector<2x16xf32>
      %c0_10 = arith.constant 0 : index
      %c0_11 = arith.constant 0 : index
      %13 = vector.load %arg6[%c0_10, %c0_11] : memref<2x16xf32, #tpu.memory_space<vmem>>, vector<2x16xf32>
      tpu.vector_store %arg6[%c0_10, %c0_11], %12 {strides = array<i32>} : memref<2x16xf32, #tpu.memory_space<vmem>>, vector<2x16xf32>,
    } else {
    }
    %c0 = arith.constant 0 : index
    %c0_1 = arith.constant 0 : index
    %3 = vector.load %arg6[%c0, %c0_1] : memref<2x16xf32, #tpu.memory_space<vmem>>, vector<2x16xf32>
    %c0_2 = arith.constant 0 : index
    %c0_3 = arith.constant 0 : index
    %4 = vector.load %arg2[%c0_2, %c0_3] : memref<2x512xf32, #tpu.memory_space<vmem>>, vector<2x512xf32>
    %c0_4 = arith.constant 0 : index
    %c0_5 = arith.constant 0 : index
    %5 = vector.load %arg3[%c0_4, %c0_5] : memref<512x16xf32, #tpu.memory_space<vmem>>, vector<512x16xf32>
    %cst = arith.constant dense<0.000000e+00> : vector<2x16xf32>
    %6 = tpu.matmul %4, %5, %cst {dimension_numbers = #tpu.dot_dimension_numbers<[1], [0], [0], [1], [0, 0, 1, 1], [], []>} : vector<2x512xf32>, vector<512x16xf32>, vector<2x16xf32> -> vector<2x16xf32>
    %7 = arith.addf %3, %6 : vector<2x16xf32>
    %c0_6 = arith.constant 0 : index
    %c0_7 = arith.constant 0 : index
    %8 = vector.load %arg6[%c0_6, %c0_7] : memref<2x16xf32, #tpu.memory_space<vmem>>, vector<2x16xf32>
    tpu.vector_store %arg6[%c0_6, %c0_7], %7 {strides = array<i32>} : memref<2x16xf32, #tpu.memory_space<vmem>>, vector<2x16xf32>,
    %c1_i32 = arith.constant 1 : i32
    %9 = arith.cmpi eq, %arg1, %c1_i32 : i32
    %10 = arith.extui %9 : i1 to i32
    %c0_i32_8 = arith.constant 0 : i32
    %11 = arith.cmpi ne, %10, %c0_i32_8 : i32
    scf.if %11 {
      %c0_9 = arith.constant 0 : index
      %c0_10 = arith.constant 0 : index
      %12 = vector.load %arg6[%c0_9, %c0_10] : memref<2x16xf32, #tpu.memory_space<vmem>>, vector<2x16xf32>
      %c0_11 = arith.constant 0 : index
      %c0_12 = arith.constant 0 : index
      %13 = vector.load %arg4[%c0_11, %c0_12] : memref<1x16xf32, #tpu.memory_space<vmem>>, vector<1x16xf32>
      %14 = vector.broadcast %13 : vector<1x16xf32> to vector<2x16xf32>
      %15 = arith.addf %12, %14 : vector<2x16xf32>
      %c0_13 = arith.constant 0 : index
      %c0_14 = arith.constant 0 : index
      %16 = vector.load %arg5[%c0_13, %c0_14] : memref<2x16xf32, #tpu.memory_space<vmem>>, vector<2x16xf32>
      tpu.vector_store %arg5[%c0_13, %c0_14], %15 {strides = array<i32>} : memref<2x16xf32, #tpu.memory_space<vmem>>, vector<2x16xf32>,
    } else {
    }
    return
  }
  func.func @transform_0(%arg0: i32, %arg1: i32) -> (i32, i32) {
    %c0_i32 = arith.constant 0 : i32
    %c0_i32_0 = arith.constant 0 : i32
    return %c0_i32, %arg1 : i32, i32
  }
  func.func @transform_1(%arg0: i32, %arg1: i32) -> (i32, i32) {
    %c0_i32 = arith.constant 0 : i32
    return %arg1, %arg0 : i32, i32
  }
  func.func @transform_2(%arg0: i32, %arg1: i32) -> (i32, i32) {
    %c0_i32 = arith.constant 0 : i32
    %c0_i32_0 = arith.constant 0 : i32
    return %c0_i32, %arg0 : i32, i32
  }
  func.func @transform_3(%arg0: i32, %arg1: i32) -> (i32, i32) {
    %c0_i32 = arith.constant 0 : i32
    %c0_i32_0 = arith.constant 0 : i32
    return %c0_i32, %arg0 : i32, i32
  }
}

</mosaic_0001>

<bundles_post_ra>
// kernel: tpu_custom_call.1
= control target key start
LH: loop header
LB: loop body
LE: loop exit
PB: predicated region body
PF: predicated region fallthrough
CT: control target
= control target key end

     0   :  { %8 = vsyncpa [#allocation4], 0  ;;  %s613_s12 = smov 0   ;;  %s615_s13 = smov 0   ;;  %s730_s0 = inlined_call_operand.vmem [shape: f32[2,1024], index: 0, kind: input, shape index: {}]   ;;  %s731_s1 = inlined_call_operand.vmem [shape: f32[1024,16], index: 1, kind: input, shape index: {}]   ;;  %s732_s2 = inlined_call_operand.vmem [shape: f32[1,16], index: 2, kind: input, shape index: {}]   ;;  %s733_s3 = inlined_call_operand.hbm [shape: f32[2,16], index: 3, kind: output, shape index: {}]  }
   0x1   :  { %s617_s14 = smov 0  }
   0x2 LB: > { %s487_s15 = sadd.s32 4294967295, %s589_s14   ;;  %s23_s16 = sadd.s32 1, %s585_s13  ;;  %s589_s14 = sphi %s617_s14, %s14_s14   ;;  %s585_s13 = sphi %s615_s13, %s735_s13   ;;  %s581_s12 = sphi %s613_s12, %s734_s12  }
   0x3   : > { %p24_p0 = scmp.ge.s32.totalorder %s23_s16, 2  ;;  %p491_p1 = scmp.ge.s32.totalorder %s589_s14, 1 }
   0x4   : > { %p175_p2 = scmp.lt.s32.totalorder %s589_s14, 3 }
   0x5   : > { %s737_s16 = smov (%p24_p0, %s23_s16), 0 }
   0x6   : > { %p176_p3 = pnand %p491_p1, %p175_p2 }
   0x7   : > { %s492_s17 = sshll.u32 (!%p176_p3), %s581_s12, 2  ;;  %s494_s18 = sshll.u32 (!%p176_p3), %s581_s12, 6 }
   0x8   : > { %179 = sbr.rel (%p176_p3) target bundleno = 211 (0xd3), region = 32  ;;  %p206_p4 = scmp.lt.s32.totalorder (!%p176_p3), %s492_s17, 7 }
   0x9   : > { %p212_p5 = scmp.lt.s32.totalorder (!%p176_p3), %s494_s18, 127  ;;  %p496_p6 = scmp.ne.s32.totalorder (!%p176_p3), %s581_s12, 0 }
   0xd   : > { %s739_s17 = smov (!%p206_p4, %s492_s17), 7  ;;  %s741_s18 = smov (!%p212_p5, %s494_s18), 127 }
   0xe   : > { %s493_s19 = sshll.u32 %s739_s17, 1  ;;  %s495_s23 = sshll.u32 %s741_s18, 3 }
   0xf   : > { %s639_s22 = scalar_lea.vmem %s730_s0, %s493_s19  ;;  %s644_s26 = scalar_lea.vmem %s731_s1, %s495_s23 }
  0x10   : > { %226 = sbr.rel (%p496_p6) target bundleno = 23 (0x17), region = 36 }
  0x15   : > { %vm227_vm0 = vcmask 123904   ;;  %v591_v0 = vmov 0.0  }
  0x16   : > { %228 = vst.msk [vmem:[#allocation2] sm:$0x3] %vm227_vm0, %v591_v0 }
  0x17 PF: > { %v278_v1 = vld [vmem:[%s644_s26 + $0x178] sm:$0xff]  ;;  %v277_v2 = vld [vmem:[%s644_s26 + $0x170] sm:$0xff]  ;;  %v276_v6 = vld [vmem:[%s644_s26 + $0x168] sm:$0xff]  ;;  %vm386_vm1 = vcmask 123904   ;;  %p497_p7 = scmp.ne.s32.totalorder %s581_s12, 1 }
  0x18   : > { %v294_v3 = vld [vmem:[%s644_s26 + $0x1f8] sm:$0xff]  ;;  %345 = vmatpush.msra.mxu2 %v278_v1  ;;  %v293_v7 = vld [vmem:[%s644_s26 + $0x1f0] sm:$0xff]  ;;  %v292_v10 = vld [vmem:[%s644_s26 + $0x1e8] sm:$0xff] }
  0x19   : > { %365 = vmatpush.msra.mxu3 %v294_v3  ;;  %v246_v4 = vld [vmem:[%s644_s26 + $0x78] sm:$0xff]  ;;  %v245_v8 = vld [vmem:[%s644_s26 + $0x70] sm:$0xff]  ;;  %v244_v11 = vld [vmem:[%s644_s26 + $0x68] sm:$0xff] }
  0x1a   : > { %v262_v5 = vld [vmem:[%s644_s26 + $0xf8] sm:$0xff]  ;;  %305 = vmatpush.msra.mxu0 %v246_v4  ;;  %v261_v9 = vld [vmem:[%s644_s26 + $0xf0] sm:$0xff]  ;;  %346 = vmatpush.msra.mxu2 %v277_v2  ;;  %v275_v12 = vld [vmem:[%s644_s26 + $0x160] sm:$0xff] }
  0x1b   : > { %325 = vmatpush.msra.mxu1 %v262_v5  ;;  %366 = vmatpush.msra.mxu3 %v293_v7  ;;  %v260_v13 = vld [vmem:[%s644_s26 + $0xe8] sm:$0xff]  ;;  %v291_v14 = vld [vmem:[%s644_s26 + $0x1e0] sm:$0xff]  ;;  %v274_v17 = vld [vmem:[%s644_s26 + $0x158] sm:$0xff] }
  0x1c   : > { %306 = vmatpush.msra.mxu0 %v245_v8  ;;  %347 = vmatpush.msra.mxu2 %v276_v6  ;;  %v243_v15 = vld [vmem:[%s644_s26 + $0x60] sm:$0xff]  ;;  %v290_v18 = vld [vmem:[%s644_s26 + $0x1d8] sm:$0xff]  ;;  %v273_v21 = vld [vmem:[%s644_s26 + $0x150] sm:$0xff] }
  0x1d   : > { %326 = vmatpush.msra.mxu1 %v261_v9  ;;  %367 = vmatpush.msra.mxu3 %v292_v10  ;;  %v259_v16 = vld [vmem:[%s644_s26 + $0xe0] sm:$0xff]  ;;  %v242_v19 = vld [vmem:[%s644_s26 + $0x58] sm:$0xff]  ;;  %v289_v22 = vld [vmem:[%s644_s26 + $0x1d0] sm:$0xff] }
  0x1e   : > { %307 = vmatpush.msra.mxu0 %v244_v11  ;;  %348 = vmatpush.msra.mxu2 %v275_v12  ;;  %v258_v20 = vld [vmem:[%s644_s26 + $0xd8] sm:$0xff]  ;;  %v241_v23 = vld [vmem:[%s644_s26 + $0x50] sm:$0xff]  ;;  %v272_v25 = vld [vmem:[%s644_s26 + $0x148] sm:$0xff] }
  0x1f   : > { %327 = vmatpush.msra.mxu1 %v260_v13  ;;  %368 = vmatpush.msra.mxu3 %v291_v14  ;;  %v257_v24 = vld [vmem:[%s644_s26 + $0xd0] sm:$0xff]  ;;  %v288_v26 = vld [vmem:[%s644_s26 + $0x1c8] sm:$0xff]  ;;  %v271_v29 = vld [vmem:[%s644_s26 + $0x140] sm:$0xff] }
  0x20   : > { %308 = vmatpush.msra.mxu0 %v243_v15  ;;  %349 = vmatpush.msra.mxu2 %v274_v17  ;;  %v240_v27 = vld [vmem:[%s644_s26 + $0x48] sm:$0xff]  ;;  %v287_v30 = vld [vmem:[%s644_s26 + $0x1c0] sm:$0xff]  ;;  %v270_v33 = vld [vmem:[%s644_s26 + $0x138] sm:$0xff] }
  0x21   : > { %328 = vmatpush.msra.mxu1 %v259_v16  ;;  %369 = vmatpush.msra.mxu3 %v290_v18  ;;  %v256_v28 = vld [vmem:[%s644_s26 + $0xc8] sm:$0xff]  ;;  %v239_v31 = vld [vmem:[%s644_s26 + $0x40] sm:$0xff]  ;;  %v286_v34 = vld [vmem:[%s644_s26 + $0x1b8] sm:$0xff] }
  0x22   : > { %309 = vmatpush.msra.mxu0 %v242_v19  ;;  %350 = vmatpush.msra.mxu2 %v273_v21  ;;  %v255_v32 = vld [vmem:[%s644_s26 + $0xc0] sm:$0xff]  ;;  %v238_v35 = vld [vmem:[%s644_s26 + $0x38] sm:$0xff]  ;;  %v269_v37 = vld [vmem:[%s644_s26 + $0x130] sm:$0xff] }
  0x23   : > { %329 = vmatpush.msra.mxu1 %v258_v20  ;;  %370 = vmatpush.msra.mxu3 %v289_v22  ;;  %v254_v36 = vld [vmem:[%s644_s26 + $0xb8] sm:$0xff]  ;;  %v285_v38 = vld [vmem:[%s644_s26 + $0x1b0] sm:$0xff]  ;;  %v268_v41 = vld [vmem:[%s644_s26 + $0x128] sm:$0xff] }
  0x24   : > { %310 = vmatpush.msra.mxu0 %v241_v23  ;;  %351 = vmatpush.msra.mxu2 %v272_v25  ;;  %v237_v39 = vld [vmem:[%s644_s26 + $0x30] sm:$0xff]  ;;  %v284_v42 = vld [vmem:[%s644_s26 + $0x1a8] sm:$0xff]  ;;  %v230_v45 = vld [vmem:[%s639_s22] sm:$0xff] }
  0x25   : > { %330 = vmatpush.msra.mxu1 %v257_v24  ;;  %371 = vmatpush.msra.mxu3 %v288_v26  ;;  %v253_v40 = vld [vmem:[%s644_s26 + $0xb0] sm:$0xff]  ;;  %v236_v43 = vld [vmem:[%s644_s26 + $0x28] sm:$0xff]  ;;  %v267_v46 = vld [vmem:[%s644_s26 + $0x120] sm:$0xff]  ;;  %296 = vst [vmem:[#allocation1] ss:$4 sm:$0xff] %v230_v45 }
  0x26   : > { %311 = vmatpush.msra.mxu0 %v240_v27  ;;  %352 = vmatpush.msra.mxu2 %v271_v29  ;;  %v252_v44 = vld [vmem:[%s644_s26 + $0xa8] sm:$0xff]  ;;  %v283_v47 = vld [vmem:[%s644_s26 + $0x1a0] sm:$0xff]  ;;  %v266_v50 = vld [vmem:[%s644_s26 + $0x118] sm:$0xff] }
  0x27   : > { %331 = vmatpush.msra.mxu1 %v256_v28  ;;  %372 = vmatpush.msra.mxu3 %v287_v30  ;;  %v235_v48 = vld [vmem:[%s644_s26 + $0x20] sm:$0xff]  ;;  %v282_v51 = vld [vmem:[%s644_s26 + $0x198] sm:$0xff]  ;;  %v265_v54 = vld [vmem:[%s644_s26 + $0x110] sm:$0xff] }
  0x28   : > { %312 = vmatpush.msra.mxu0 %v239_v31  ;;  %353 = vmatpush.msra.mxu2 %v270_v33  ;;  %v251_v49 = vld [vmem:[%s644_s26 + $0xa0] sm:$0xff]  ;;  %v234_v52 = vld [vmem:[%s644_s26 + $0x18] sm:$0xff]  ;;  %v281_v55 = vld [vmem:[%s644_s26 + $0x190] sm:$0xff] }
  0x29   : > { %332 = vmatpush.msra.mxu1 %v255_v32  ;;  %373 = vmatpush.msra.mxu3 %v286_v34  ;;  %v250_v53 = vld [vmem:[%s644_s26 + $0x98] sm:$0xff]  ;;  %v233_v56 = vld [vmem:[%s644_s26 + $0x10] sm:$0xff]  ;;  %v264_v58 = vld [vmem:[%s644_s26 + $0x108] sm:$0xff] }
  0x2a   : > { %313 = vmatpush.msra.mxu0 %v238_v35  ;;  %354 = vmatpush.msra.mxu2 %v269_v37  ;;  %v249_v57 = vld [vmem:[%s644_s26 + $0x90] sm:$0xff]  ;;  %v280_v59 = vld [vmem:[%s644_s26 + $0x188] sm:$0xff]  ;;  %v263_v62 = vld [vmem:[%s644_s26 + $0x100] sm:$0xff] }
  0x2b   : > { %333 = vmatpush.msra.mxu1 %v254_v36  ;;  %374 = vmatpush.msra.mxu3 %v285_v38  ;;  %v232_v60 = vld [vmem:[%s644_s26 + $0x8] sm:$0xff]  ;;  %v279_v63 = vld [vmem:[%s644_s26 + $0x180] sm:$0xff] }
  0x2c   : > { %314 = vmatpush.msra.mxu0 %v237_v39  ;;  %355 = vmatpush.msra.mxu2 %v268_v41  ;;  %v248_v61 = vld [vmem:[%s644_s26 + $0x88] sm:$0xff]  ;;  %v299_v0 = vld.sshfl [vmem:[#allocation1 + $0x10] sm:$0xff pattern:$0x73625140]  ;;  %v231_v2 = vld [vmem:[%s644_s26] sm:$0xff] }
  0x2d   : > { %334 = vmatpush.msra.mxu1 %v253_v40  ;;  %375 = vmatpush.msra.mxu3 %v284_v42  ;;  %v300_v1 = vld.sshfl [vmem:[#allocation1 + $0x18] sm:$0xff pattern:$0x73625140]  ;;  %v247_v3 = vld [vmem:[%s644_s26 + $0x80] sm:$0xff]  ;;  %v229_v12 = vld [vmem:[#allocation2] sm:$0x3] }
  0x2e   : > { %315 = vmatpush.msra.mxu0 %v236_v43  ;;  %356 = vmatpush.msra.mxu2 %v267_v46  ;;  %v297_v4 = vld.sshfl [vmem:[#allocation1] sm:$0xff pattern:$0x73625140]  ;;  %v298_v5 = vld.sshfl [vmem:[#allocation1 + $0x8] sm:$0xff pattern:$0x73625140] }
  0x2f   : > { %335 = vmatpush.msra.mxu1 %v252_v44  ;;  %376 = vmatpush.msra.mxu3 %v283_v47 }
  0x30   : > { %316 = vmatpush.msra.mxu0 %v235_v48  ;;  %357 = vmatpush.msra.mxu2 %v266_v50 }
  0x31   : > { %336 = vmatpush.msra.mxu1 %v251_v49  ;;  %377 = vmatpush.msra.mxu3 %v282_v51 }
  0x32   : > { %317 = vmatpush.msra.mxu0 %v234_v52  ;;  %358 = vmatpush.msra.mxu2 %v265_v54 }
  0x33   : > { %337 = vmatpush.msra.mxu1 %v250_v53  ;;  %378 = vmatpush.msra.mxu3 %v281_v55 }
  0x34   : > { %318 = vmatpush.msra.mxu0 %v233_v56  ;;  %359 = vmatpush.msra.mxu2 %v264_v58 }
  0x35   : > { %338 = vmatpush.msra.mxu1 %v249_v57  ;;  %379 = vmatpush.msra.mxu3 %v280_v59 }
  0x36   : > { %319 = vmatpush.msra.mxu0 %v232_v60  ;;  %360 = vmatpush.msra.mxu2 %v263_v62 }
  0x37   : > { %339 = vmatpush.msra.mxu1 %v248_v61  ;;  %380 = vmatpush.msra.mxu3 %v279_v63 }
  0x38   : > { %361 = vmatmul.f32.vlgmr.msra.gmra.mxu2 %v299_v0  ;;  %381 = vmatmul.f32.vlgmr.msra.gmra.mxu3 %v300_v1 }
  0x39   : > { %320 = vmatpush.msra.mxu0 %v231_v2  ;;  %340 = vmatpush.msra.mxu1 %v247_v3 }
  0x3a   : > { %321 = vmatmul.f32.vlgmr.msra.gmra.mxu0 %v297_v4  ;;  %341 = vmatmul.f32.vlgmr.msra.gmra.mxu1 %v298_v5 }
  0xb7   : > { %v322_v6 = vpop.f32.mrf.mxu0  ;;  %v342_v7 = vpop.f32.mrf.mxu1 }
  0xb8   : > { %v343_v8 = vadd.f32 %v342_v7, %v322_v6 }
  0xbb   : > { %v362_v9 = vpop.f32.mrf.mxu2  ;;  %v382_v10 = vpop.f32.mrf.mxu3 }
  0xbc   : > { %v363_v11 = vadd.f32 %v362_v9, %v343_v8 }
  0xbe   : > { %v383_v13 = vadd.f32 %v382_v10, %v363_v11  ;;  %391 = sbr.rel (%p497_p7) target bundleno = 205 (0xcd), region = 40 }
  0xc0   : > { %v385_v14 = vadd.f32 %v383_v13, %v229_v12 }
  0xc2   : > { %387 = vst.msk [vmem:[#allocation2] sm:$0x3] %vm386_vm1, %v385_v14 }
  0xc3   : > { %v534_v16 = vld [vmem:[%s732_s2] ss:$0 sm:$0xff] }
  0xc9   : > { %v392_v15 = vld [vmem:[#allocation2] sm:$0x3] }
  0xca   : > { %v397_v17 = vadd.f32 %v534_v16, %v392_v15 }
  0xcc   : > { %398 = vst.msk [vmem:[#allocation3] sm:$0x3] %vm386_vm1, %v397_v17 }
  0xcd PF: > { %p506_p8 = scmp.eq.s32.totalorder %s487_s15, 1  ;;  %s409_s4 = sshll.u32 %s733_s3, 4  ;;  %s410_s4 = int_to_ptr.hbm [resolvable:$true] %s409_s4 }
  0xce   : > { %s592_s5 = smov [#allocation3]  }
  0xcf   : > { %s407_s6 = sshll.u32 %s592_s5, 4  ;;  %s408_s6 = int_to_ptr.vmem [resolvable:$true] %s407_s6 }
  0xd0   : > { %503 = dma.vmem_to_hbm [thread:$0]  (%p506_p8), %s408_s6, 32, %s410_s4, [#allocation4]  }
  0xd1   : > { %576 = dma.done.wait (%p506_p8), [#allocation4], 32  }
  0xd2   : > { %578 = vsyncadd (%p506_p8), [#allocation4], 4294967264 }
  0xd3 PF: > { %s14_s14 = sadd.s32 1, %s589_s14   ;;  %s734_s12 = smov %s585_s13 }
  0xd4   : > { %p11_p9 = scmp.ge.s32.totalorder %s14_s14, 4   ;;  %s735_s13 = smov %s737_s16 }
  0xd6   :  { %13 = sbr.rel (!%p11_p9) target bundleno = 2 (0x2), region = 74 }
  0xdb   :  { %423 = vsyncpa [#allocation4], 1 }
  0xdc   :  { %425 = vsyncpa [#allocation4 + $0x1], 1 }

</bundles_post_ra>
